<compile_context>
chip_gen: v7x
topology: tpu7x:2x2x1
jax: 0.10.0
libtpu: 0.0.40
codegen_flags: <defaults>
</compile_context>

<pallas_src>
import math

import jax
import jax.numpy as jnp
from jax import lax
from jax.experimental import pallas as pl
from jax.experimental.pallas import tpu as pltpu


def _gelu(v):
    # exact (erf-based) GELU, matching torch.nn.GELU() default
    return 0.5 * v * (1.0 + lax.erf(v * (1.0 / math.sqrt(2.0))))


def _slab_layout(C, HD, SE):
    """Column layout of the packed (HD, ncols) weight slab."""
    off = {}
    c = 0
    for name, width in (("w1", C), ("b1", 1), ("bdw", 1), ("wse1", SE),
                        ("bse1", SE), ("wse2", SE), ("bse2", 1),
                        ("w2", HD), ("b2", 1)):
        off[name] = (c, c + width)
        c += width
    return off, c


def _make_mbconv_kernel(H, W, Bt, C, HD, SE, layout):
    HW = H * W
    N = Bt * HW
    IMG_ROW = 9 * HD          # first image-indicator row inside const_ref
    inv_hw = 1.0 / float(HW)

    def kernel(x_ref, const_ref, slab_ref, o_ref):
        # ---- unpack the packed weight slab (static slices, one DMA) --------
        lo, hi = layout["w1"];   w1 = slab_ref[:, lo:hi]          # (HD, C)
        lo, hi = layout["b1"];   b1 = slab_ref[:, lo:hi]          # (HD, 1)
        lo, hi = layout["bdw"];  bdw = slab_ref[:, lo:hi]         # (HD, 1)
        lo, hi = layout["wse1"]; wse1 = slab_ref[:, lo:hi]        # (HD, SE)
        lo, hi = layout["bse1"]; bse1 = slab_ref[0:1, lo:hi]      # (1, SE)
        lo, hi = layout["wse2"]; wse2t = slab_ref[:, lo:hi]       # (HD, SE)
        lo, hi = layout["bse2"]; bse2 = slab_ref[:, lo:hi]        # (HD, 1)
        lo, hi = layout["w2"];   w2 = slab_ref[0:C, lo:hi]        # (C, HD)
        lo, hi = layout["b2"];   b2 = slab_ref[0:C, lo:hi]        # (C, 1)

        x = x_ref[...]                                            # (C, N)

        # ---- 1x1 expansion conv + GELU  (lane-dense N = Bt*HW) -------------
        h = _gelu(jnp.dot(w1, x, preferred_element_type=jnp.float32) + b1)

        # ---- 3x3 depthwise conv: lane rolls * premasked weight planes ------
        terms = []
        for t in range(9):
            di, dj = t // 3, t % 3
            shift = (di - 1) * W + (dj - 1)     # output p reads input p+shift
            src = h if shift == 0 else pltpu.roll(h, shift=(-shift) % N, axis=1)
            terms.append(src * const_ref[t * HD:(t + 1) * HD, :])
        # pairwise tree-sum of the 9 tap contributions
        while len(terms) > 1:
            nxt = [terms[i] + terms[i + 1] for i in range(0, len(terms) - 1, 2)]
            if len(terms) % 2:
                nxt.append(terms[-1])
            terms = nxt
        d = _gelu(terms[0] + bdw)                                 # (HD, N)

        # ---- squeeze & excitation (VPU/XLU only, no MXU matvecs) -----------
        def se_gate(pooled):                                      # pooled (HD, 1)
            s1 = _gelu(jnp.sum(wse1 * pooled, axis=0, keepdims=True) + bse1)
            return jax.nn.sigmoid(
                jnp.sum(wse2t * s1, axis=1, keepdims=True) + bse2)    # (HD, 1)

        if Bt == 1:
            gate_full = se_gate(jnp.mean(d, axis=1, keepdims=True))
        else:
            gate_full = None
            for b in range(Bt):
                m = const_ref[IMG_ROW + b]                        # (N,) 0/1 mask
                pooled = jnp.sum(d * m, axis=1, keepdims=True) * inv_hw
                term = se_gate(pooled) * m                        # (HD, N)
                gate_full = term if gate_full is None else gate_full + term
        se = d * gate_full

        # ---- 1x1 projection conv -------------------------------------------
        out = jnp.dot(w2, se, preferred_element_type=jnp.float32) + b2
        o_ref[...] = out.astype(o_ref.dtype)

    return kernel


def _pick_bt(B, HW, max_lanes=2048):
    """Number of images folded into the lane axis per grid step."""
    bt = 1
    for cand in range(1, B + 1):
        if B % cand == 0 and cand * HW <= max_lanes:
            bt = cand
    # prefer an even number of parallel grid steps (v7x: 2 TensorCores)
    if (B // bt) % 2 == 1 and bt % 2 == 0:
        bt //= 2
    return bt


def mbconv_forward(x_nchw, params):
    f32 = jnp.float32
    x = x_nchw.astype(f32)
    B, C, H, W = x.shape
    HW = H * W
    HD = params["w1"].shape[1]
    SE = params["wse1"].shape[1]

    Bt = _pick_bt(B, HW)
    N = Bt * HW
    assert B % Bt == 0 and N % 128 == 0, (B, Bt, HW)

    # batch folded into lanes: image b occupies columns [b*HW, (b+1)*HW)
    x_flat = x.reshape(B, C, HW).transpose(1, 0, 2).reshape(C, B * HW)

    # --- packed weight slab (single DMA) ---------------------------------
    layout, ncols = _slab_layout(C, HD, SE)
    slab = jnp.zeros((HD, ncols), f32)

    def put(s, name, val, rows):
        lo, hi = layout[name]
        return s.at[0:rows, lo:hi].set(jnp.asarray(val, f32))

    slab = put(slab, "w1", params["w1"].T, HD)                 # (HD, C)
    slab = put(slab, "b1", params["b1"].reshape(HD, 1), HD)
    slab = put(slab, "bdw", params["bdw"].reshape(HD, 1), HD)
    slab = put(slab, "wse1", params["wse1"], HD)               # (HD, SE)
    slab = put(slab, "bse1", params["bse1"].reshape(1, SE), 1)
    slab = put(slab, "wse2", params["wse2"].T, HD)             # (HD, SE)
    slab = put(slab, "bse2", params["bse2"].reshape(HD, 1), HD)
    slab = put(slab, "w2", params["w2"].T, C)                  # (C, HD)
    slab = put(slab, "b2", params["b2"].reshape(C, 1), C)

    # --- per-block constants: premasked depthwise tap planes + image masks
    wdw9 = params["wdw"].reshape(9, HD).astype(f32)            # [tap, channel]
    pos = jnp.arange(N)
    row = (pos % HW) // W          # row within image (modulo HW: no cross-image leak)
    col = pos % W
    planes = []
    for di in range(3):
        for dj in range(3):
            rr = row + (di - 1)
            cc = col + (dj - 1)
            ok = ((rr >= 0) & (rr < H) & (cc >= 0) & (cc < W)).astype(f32)   # (N,)
            planes.append(wdw9[di * 3 + dj][:, None] * ok[None, :])          # (HD, N)
    img_masks = ((pos // HW)[None, :] == jnp.arange(Bt)[:, None]).astype(f32)  # (Bt, N)
    const = jnp.concatenate(planes + [img_masks], axis=0)      # (9*HD + Bt, N)

    kernel = _make_mbconv_kernel(H, W, Bt, C, HD, SE, layout)

    out_flat = pl.pallas_call(
        kernel,
        out_shape=jax.ShapeDtypeStruct((C, B * HW), f32),
        grid=(B // Bt,),
        in_specs=[
            pl.BlockSpec((C, N), lambda i: (0, i)),            # activations
            pl.BlockSpec(const.shape, lambda i: (0, 0)),       # tap planes + img masks
            pl.BlockSpec(slab.shape, lambda i: (0, 0)),        # packed weights
        ],
        out_specs=pl.BlockSpec((C, N), lambda i: (0, i)),
        compiler_params=pltpu.CompilerParams(
            dimension_semantics=("parallel",)),                # batch is independent
    )(x_flat, const, slab)

    return out_flat.reshape(C, B, HW).transpose(1, 0, 2).reshape(B, C, H, W)


def init_params(key, dim, growth_rate=2.0, shrinkage_rate=0.25):
    hd = int(dim * growth_rate)
    se = int(hd * shrinkage_rate)
    ks = jax.random.split(key, 10)
    n = lambda k, shape: 0.1 * jax.random.normal(k, shape, jnp.float32)
    return dict(
        w1=n(ks[0], (dim, hd)),   b1=n(ks[1], (1, hd)),    # Conv2d(dim, hd, 1)
        wdw=n(ks[2], (3, 3, hd)), bdw=n(ks[3], (1, hd)),   # depthwise 3x3
        wse1=n(ks[4], (hd, se)),  bse1=n(ks[5], (1, se)),  # SE squeeze 1x1
        wse2=n(ks[6], (se, hd)),  bse2=n(ks[7], (1, hd)),  # SE excite 1x1
        w2=n(ks[8], (hd, dim)),   b2=n(ks[9], (1, dim)),   # Conv2d(hd, dim, 1)
    )


def mbconv_ref(x_nchw, p):
    # pure-JAX reference (NHWC convs) used only for validation
    x = jnp.transpose(x_nchw, (0, 2, 3, 1)).astype(jnp.float32)
    C = x.shape[-1]
    HD = p["w1"].shape[1]
    dn = ("NHWC", "HWIO", "NHWC")
    h = lax.conv_general_dilated(x, p["w1"].reshape(1, 1, C, HD), (1, 1),
                                 "VALID", dimension_numbers=dn) + p["b1"][0]
    h = _gelu(h)
    d = lax.conv_general_dilated(h, p["wdw"].reshape(3, 3, 1, HD), (1, 1),
                                 "SAME", dimension_numbers=dn,
                                 feature_group_count=HD) + p["bdw"][0]
    d = _gelu(d)
    pooled = jnp.mean(d, axis=(1, 2), keepdims=True)
    s1 = _gelu(jnp.einsum("bijc,cd->bijd", pooled, p["wse1"]) + p["bse1"][0])
    gate = jax.nn.sigmoid(
        jnp.einsum("bijc,cd->bijd", s1, p["wse2"]) + p["bse2"][0])
    d = d * gate
    out = lax.conv_general_dilated(d, p["w2"].reshape(1, 1, HD, C), (1, 1),
                                   "VALID", dimension_numbers=dn) + p["b2"][0]
    return jnp.transpose(out, (0, 3, 1, 2))


if __name__ == "__main__":
    key = jax.random.PRNGKey(0)
    kx, kp = jax.random.split(key)
    dim = 4                                     # MBConv(dim=4) -> hidden_dim=8
    x = jax.random.normal(kx, (4, dim, 16, 16), jnp.float32)   # NCHW input
    params = init_params(kp, dim)

    out = jax.block_until_ready(mbconv_forward(x, params))

    ref = mbconv_ref(x, params)
    assert out.shape == ref.shape == x.shape
    if not jnp.allclose(out, ref, atol=1e-3, rtol=1e-3):
        max_err = float(jnp.max(jnp.abs(out - ref)))
        raise AssertionError(f"mismatch vs reference, max abs err = {max_err}")
    print("KERNEL_OK")
</pallas_src>

<mosaic_0001>
module attributes {stable_mosaic.version = 11 : i64} {
  func.func @kernel(%arg0: i32, %arg1: memref<4x512xf32, #tpu.memory_space<vmem>>, %arg2: memref<74x512xf32, #tpu.memory_space<vmem>>, %arg3: memref<8x22xf32, #tpu.memory_space<vmem>>, %arg4: memref<4x512xf32, #tpu.memory_space<vmem>>) attributes {dimension_semantics = [#tpu.dimension_semantics<parallel>], iteration_bounds = array<i64: 2>, scalar_prefetch = 0 : i64, scratch_operands = 0 : i64, tpu.core_type = #tpu.core_type<tc>, window_params = [{transform_indices = @transform_0, window_bounds = array<i64: 4, 512>}, {pipeline_mode = #tpu.pipeline_mode<synchronous>, transform_indices = @transform_1, window_bounds = array<i64: 74, 512>}, {pipeline_mode = #tpu.pipeline_mode<synchronous>, transform_indices = @transform_2, window_bounds = array<i64: 8, 22>}, {transform_indices = @transform_3, window_bounds = array<i64: 4, 512>}]} {
    %c0 = arith.constant 0 : index
    %c0_0 = arith.constant 0 : index
    %0 = vector.load %arg3[%c0, %c0_0] : memref<8x22xf32, #tpu.memory_space<vmem>>, vector<8x4xf32>
    %c0_1 = arith.constant 0 : index
    %c4 = arith.constant 4 : index
    %1 = vector.load %arg3[%c0_1, %c4] : memref<8x22xf32, #tpu.memory_space<vmem>>, vector<8x1xf32>
    %c0_2 = arith.constant 0 : index
    %c5 = arith.constant 5 : index
    %2 = vector.load %arg3[%c0_2, %c5] : memref<8x22xf32, #tpu.memory_space<vmem>>, vector<8x1xf32>
    %c0_3 = arith.constant 0 : index
    %c6 = arith.constant 6 : index
    %3 = vector.load %arg3[%c0_3, %c6] : memref<8x22xf32, #tpu.memory_space<vmem>>, vector<8x2xf32>
    %c0_4 = arith.constant 0 : index
    %c8 = arith.constant 8 : index
    %4 = vector.load %arg3[%c0_4, %c8] : memref<8x22xf32, #tpu.memory_space<vmem>>, vector<1x2xf32>
    %c0_5 = arith.constant 0 : index
    %c10 = arith.constant 10 : index
    %5 = vector.load %arg3[%c0_5, %c10] : memref<8x22xf32, #tpu.memory_space<vmem>>, vector<8x2xf32>
    %c0_6 = arith.constant 0 : index
    %c12 = arith.constant 12 : index
    %6 = vector.load %arg3[%c0_6, %c12] : memref<8x22xf32, #tpu.memory_space<vmem>>, vector<8x1xf32>
    %c0_7 = arith.constant 0 : index
    %c13 = arith.constant 13 : index
    %7 = vector.load %arg3[%c0_7, %c13] : memref<8x22xf32, #tpu.memory_space<vmem>>, vector<4x8xf32>
    %c0_8 = arith.constant 0 : index
    %c21 = arith.constant 21 : index
    %8 = vector.load %arg3[%c0_8, %c21] : memref<8x22xf32, #tpu.memory_space<vmem>>, vector<4x1xf32>
    %c0_9 = arith.constant 0 : index
    %c0_10 = arith.constant 0 : index
    %9 = vector.load %arg1[%c0_9, %c0_10] : memref<4x512xf32, #tpu.memory_space<vmem>>, vector<4x512xf32>
    %cst = arith.constant dense<0.000000e+00> : vector<8x512xf32>
    %10 = tpu.matmul %0, %9, %cst {dimension_numbers = #tpu.dot_dimension_numbers<[1], [0], [0], [1], [0, 0, 1, 1], [], []>} : vector<8x4xf32>, vector<4x512xf32>, vector<8x512xf32> -> vector<8x512xf32>
    %11 = vector.broadcast %1 : vector<8x1xf32> to vector<8x512xf32>
    %12 = arith.addf %10, %11 : vector<8x512xf32>
    %cst_11 = arith.constant 5.000000e-01 : f32
    %13 = vector.broadcast %cst_11 : f32 to vector<8x512xf32>
    %14 = arith.mulf %13, %12 : vector<8x512xf32>
    %cst_12 = arith.constant 0.707106769 : f32
    %15 = vector.broadcast %cst_12 : f32 to vector<8x512xf32>
    %16 = arith.mulf %12, %15 : vector<8x512xf32>
    %17 = math.erf %16 : vector<8x512xf32>
    %cst_13 = arith.constant 1.000000e+00 : f32
    %18 = vector.broadcast %cst_13 : f32 to vector<8x512xf32>
    %19 = arith.addf %18, %17 : vector<8x512xf32>
    %20 = arith.mulf %14, %19 : vector<8x512xf32>
    %c17_i32 = arith.constant 17 : i32
    %21 = tpu.dynamic_rotate %20 by %c17_i32 dim 1 : vector<8x512xf32>, i32 -> vector<8x512xf32>
    %c0_14 = arith.constant 0 : index
    %c0_15 = arith.constant 0 : index
    %22 = vector.load %arg2[%c0_14, %c0_15] : memref<74x512xf32, #tpu.memory_space<vmem>>, vector<8x512xf32>
    %23 = arith.mulf %21, %22 : vector<8x512xf32>
    %c16_i32 = arith.constant 16 : i32
    %24 = tpu.dynamic_rotate %20 by %c16_i32 dim 1 : vector<8x512xf32>, i32 -> vector<8x512xf32>
    %c8_16 = arith.constant 8 : index
    %c0_17 = arith.constant 0 : index
    %25 = vector.load %arg2[%c8_16, %c0_17] : memref<74x512xf32, #tpu.memory_space<vmem>>, vector<8x512xf32>
    %26 = arith.mulf %24, %25 : vector<8x512xf32>
    %c15_i32 = arith.constant 15 : i32
    %27 = tpu.dynamic_rotate %20 by %c15_i32 dim 1 : vector<8x512xf32>, i32 -> vector<8x512xf32>
    %c16 = arith.constant 16 : index
    %c0_18 = arith.constant 0 : index
    %28 = vector.load %arg2[%c16, %c0_18] : memref<74x512xf32, #tpu.memory_space<vmem>>, vector<8x512xf32>
    %29 = arith.mulf %27, %28 : vector<8x512xf32>
    %c1_i32 = arith.constant 1 : i32
    %30 = tpu.dynamic_rotate %20 by %c1_i32 dim 1 : vector<8x512xf32>, i32 -> vector<8x512xf32>
    %c24 = arith.constant 24 : index
    %c0_19 = arith.constant 0 : index
    %31 = vector.load %arg2[%c24, %c0_19] : memref<74x512xf32, #tpu.memory_space<vmem>>, vector<8x512xf32>
    %32 = arith.mulf %30, %31 : vector<8x512xf32>
    %c32 = arith.constant 32 : index
    %c0_20 = arith.constant 0 : index
    %33 = vector.load %arg2[%c32, %c0_20] : memref<74x512xf32, #tpu.memory_space<vmem>>, vector<8x512xf32>
    %34 = arith.mulf %20, %33 : vector<8x512xf32>
    %c511_i32 = arith.constant 511 : i32
    %35 = tpu.dynamic_rotate %20 by %c511_i32 dim 1 : vector<8x512xf32>, i32 -> vector<8x512xf32>
    %c40 = arith.constant 40 : index
    %c0_21 = arith.constant 0 : index
    %36 = vector.load %arg2[%c40, %c0_21] : memref<74x512xf32, #tpu.memory_space<vmem>>, vector<8x512xf32>
    %37 = arith.mulf %35, %36 : vector<8x512xf32>
    %c497_i32 = arith.constant 497 : i32
    %38 = tpu.dynamic_rotate %20 by %c497_i32 dim 1 : vector<8x512xf32>, i32 -> vector<8x512xf32>
    %c48 = arith.constant 48 : index
    %c0_22 = arith.constant 0 : index
    %39 = vector.load %arg2[%c48, %c0_22] : memref<74x512xf32, #tpu.memory_space<vmem>>, vector<8x512xf32>
    %40 = arith.mulf %38, %39 : vector<8x512xf32>
    %c496_i32 = arith.constant 496 : i32
    %41 = tpu.dynamic_rotate %20 by %c496_i32 dim 1 : vector<8x512xf32>, i32 -> vector<8x512xf32>
    %c56 = arith.constant 56 : index
    %c0_23 = arith.constant 0 : index
    %42 = vector.load %arg2[%c56, %c0_23] : memref<74x512xf32, #tpu.memory_space<vmem>>, vector<8x512xf32>
    %43 = arith.mulf %41, %42 : vector<8x512xf32>
    %c495_i32 = arith.constant 495 : i32
    %44 = tpu.dynamic_rotate %20 by %c495_i32 dim 1 : vector<8x512xf32>, i32 -> vector<8x512xf32>
    %c64 = arith.constant 64 : index
    %c0_24 = arith.constant 0 : index
    %45 = vector.load %arg2[%c64, %c0_24] : memref<74x512xf32, #tpu.memory_space<vmem>>, vector<8x512xf32>
    %46 = arith.mulf %44, %45 : vector<8x512xf32>
    %47 = arith.addf %23, %26 : vector<8x512xf32>
    %48 = arith.addf %29, %32 : vector<8x512xf32>
    %49 = arith.addf %34, %37 : vector<8x512xf32>
    %50 = arith.addf %40, %43 : vector<8x512xf32>
    %51 = arith.addf %47, %48 : vector<8x512xf32>
    %52 = arith.addf %49, %50 : vector<8x512xf32>
    %53 = arith.addf %51, %52 : vector<8x512xf32>
    %54 = arith.addf %53, %46 : vector<8x512xf32>
    %55 = vector.broadcast %2 : vector<8x1xf32> to vector<8x512xf32>
    %56 = arith.addf %54, %55 : vector<8x512xf32>
    %cst_25 = arith.constant 5.000000e-01 : f32
    %57 = vector.broadcast %cst_25 : f32 to vector<8x512xf32>
    %58 = arith.mulf %57, %56 : vector<8x512xf32>
    %cst_26 = arith.constant 0.707106769 : f32
    %59 = vector.broadcast %cst_26 : f32 to vector<8x512xf32>
    %60 = arith.mulf %56, %59 : vector<8x512xf32>
    %61 = math.erf %60 : vector<8x512xf32>
    %cst_27 = arith.constant 1.000000e+00 : f32
    %62 = vector.broadcast %cst_27 : f32 to vector<8x512xf32>
    %63 = arith.addf %62, %61 : vector<8x512xf32>
    %64 = arith.mulf %58, %63 : vector<8x512xf32>
    %c72 = arith.constant 72 : index
    %c0_28 = arith.constant 0 : index
    %65 = vector.load %arg2[%c72, %c0_28] : memref<74x512xf32, #tpu.memory_space<vmem>>, vector<1x512xf32>
    %66 = vector.shape_cast %65 : vector<1x512xf32> to vector<512xf32>
    %67 = vector.shape_cast %66 : vector<512xf32> to vector<1x512xf32>
    %68 = vector.broadcast %67 : vector<1x512xf32> to vector<8x512xf32>
    %69 = arith.mulf %64, %68 : vector<8x512xf32>
    %cst_29 = arith.constant dense<0.000000e+00> : vector<8xf32>
    %70 = vector.multi_reduction <add>, %69, %cst_29 [1] : vector<8x512xf32> to vector<8xf32>
    %71 = vector.shape_cast %70 : vector<8xf32> to vector<8x1xf32>
    %cst_30 = arith.constant 3.906250e-03 : f32
    %72 = vector.broadcast %cst_30 : f32 to vector<8x1xf32>
    %73 = arith.mulf %71, %72 : vector<8x1xf32>
    %74 = vector.broadcast %73 : vector<8x1xf32> to vector<8x2xf32>
    %75 = arith.mulf %3, %74 : vector<8x2xf32>
    %cst_31 = arith.constant dense<0.000000e+00> : vector<2xf32>
    %76 = vector.multi_reduction <add>, %75, %cst_31 [0] : vector<8x2xf32> to vector<2xf32>
    %77 = vector.shape_cast %76 : vector<2xf32> to vector<1x2xf32>
    %78 = arith.addf %77, %4 : vector<1x2xf32>
    %cst_32 = arith.constant 5.000000e-01 : f32
    %79 = vector.broadcast %cst_32 : f32 to vector<1x2xf32>
    %80 = arith.mulf %79, %78 : vector<1x2xf32>
    %cst_33 = arith.constant 0.707106769 : f32
    %81 = vector.broadcast %cst_33 : f32 to vector<1x2xf32>
    %82 = arith.mulf %78, %81 : vector<1x2xf32>
    %83 = math.erf %82 : vector<1x2xf32>
    %cst_34 = arith.constant 1.000000e+00 : f32
    %84 = vector.broadcast %cst_34 : f32 to vector<1x2xf32>
    %85 = arith.addf %84, %83 : vector<1x2xf32>
    %86 = arith.mulf %80, %85 : vector<1x2xf32>
    %87 = vector.broadcast %86 : vector<1x2xf32> to vector<8x2xf32>
    %88 = arith.mulf %5, %87 : vector<8x2xf32>
    %cst_35 = arith.constant dense<0.000000e+00> : vector<8xf32>
    %89 = vector.multi_reduction <add>, %88, %cst_35 [1] : vector<8x2xf32> to vector<8xf32>
    %90 = vector.shape_cast %89 : vector<8xf32> to vector<8x1xf32>
    %91 = arith.addf %90, %6 : vector<8x1xf32>
    %92 = arith.negf %91 : vector<8x1xf32>
    %93 = math.exp %92 : vector<8x1xf32>
    %cst_36 = arith.constant 1.000000e+00 : f32
    %94 = vector.broadcast %cst_36 : f32 to vector<8x1xf32>
    %95 = arith.addf %94, %93 : vector<8x1xf32>
    %96 = arith.divf %94, %95 : vector<8x1xf32>
    %97 = vector.shape_cast %66 : vector<512xf32> to vector<1x512xf32>
    %98 = vector.broadcast %96 : vector<8x1xf32> to vector<8x512xf32>
    %99 = vector.broadcast %97 : vector<1x512xf32> to vector<8x512xf32>
    %100 = arith.mulf %98, %99 : vector<8x512xf32>
    %c73 = arith.constant 73 : index
    %c0_37 = arith.constant 0 : index
    %101 = vector.load %arg2[%c73, %c0_37] : memref<74x512xf32, #tpu.memory_space<vmem>>, vector<1x512xf32>
    %102 = vector.shape_cast %101 : vector<1x512xf32> to vector<512xf32>
    %103 = vector.shape_cast %102 : vector<512xf32> to vector<1x512xf32>
    %104 = vector.broadcast %103 : vector<1x512xf32> to vector<8x512xf32>
    %105 = arith.mulf %64, %104 : vector<8x512xf32>
    %cst_38 = arith.constant dense<0.000000e+00> : vector<8xf32>
    %106 = vector.multi_reduction <add>, %105, %cst_38 [1] : vector<8x512xf32> to vector<8xf32>
    %107 = vector.shape_cast %106 : vector<8xf32> to vector<8x1xf32>
    %cst_39 = arith.constant 3.906250e-03 : f32
    %108 = vector.broadcast %cst_39 : f32 to vector<8x1xf32>
    %109 = arith.mulf %107, %108 : vector<8x1xf32>
    %110 = vector.broadcast %109 : vector<8x1xf32> to vector<8x2xf32>
    %111 = arith.mulf %3, %110 : vector<8x2xf32>
    %cst_40 = arith.constant dense<0.000000e+00> : vector<2xf32>
    %112 = vector.multi_reduction <add>, %111, %cst_40 [0] : vector<8x2xf32> to vector<2xf32>
    %113 = vector.shape_cast %112 : vector<2xf32> to vector<1x2xf32>
    %114 = arith.addf %113, %4 : vector<1x2xf32>
    %cst_41 = arith.constant 5.000000e-01 : f32
    %115 = vector.broadcast %cst_41 : f32 to vector<1x2xf32>
    %116 = arith.mulf %115, %114 : vector<1x2xf32>
    %cst_42 = arith.constant 0.707106769 : f32
    %117 = vector.broadcast %cst_42 : f32 to vector<1x2xf32>
    %118 = arith.mulf %114, %117 : vector<1x2xf32>
    %119 = math.erf %118 : vector<1x2xf32>
    %cst_43 = arith.constant 1.000000e+00 : f32
    %120 = vector.broadcast %cst_43 : f32 to vector<1x2xf32>
    %121 = arith.addf %120, %119 : vector<1x2xf32>
    %122 = arith.mulf %116, %121 : vector<1x2xf32>
    %123 = vector.broadcast %122 : vector<1x2xf32> to vector<8x2xf32>
    %124 = arith.mulf %5, %123 : vector<8x2xf32>
    %cst_44 = arith.constant dense<0.000000e+00> : vector<8xf32>
    %125 = vector.multi_reduction <add>, %124, %cst_44 [1] : vector<8x2xf32> to vector<8xf32>
    %126 = vector.shape_cast %125 : vector<8xf32> to vector<8x1xf32>
    %127 = arith.addf %126, %6 : vector<8x1xf32>
    %128 = arith.negf %127 : vector<8x1xf32>
    %129 = math.exp %128 : vector<8x1xf32>
    %cst_45 = arith.constant 1.000000e+00 : f32
    %130 = vector.broadcast %cst_45 : f32 to vector<8x1xf32>
    %131 = arith.addf %130, %129 : vector<8x1xf32>
    %132 = arith.divf %130, %131 : vector<8x1xf32>
    %133 = vector.shape_cast %102 : vector<512xf32> to vector<1x512xf32>
    %134 = vector.broadcast %132 : vector<8x1xf32> to vector<8x512xf32>
    %135 = vector.broadcast %133 : vector<1x512xf32> to vector<8x512xf32>
    %136 = arith.mulf %134, %135 : vector<8x512xf32>
    %137 = arith.addf %100, %136 : vector<8x512xf32>
    %138 = arith.mulf %64, %137 : vector<8x512xf32>
    %cst_46 = arith.constant dense<0.000000e+00> : vector<4x512xf32>
    %139 = tpu.matmul %7, %138, %cst_46 {dimension_numbers = #tpu.dot_dimension_numbers<[1], [0], [0], [1], [0, 0, 1, 1], [], []>} : vector<4x8xf32>, vector<8x512xf32>, vector<4x512xf32> -> vector<4x512xf32>
    %140 = vector.broadcast %8 : vector<4x1xf32> to vector<4x512xf32>
    %141 = arith.addf %139, %140 : vector<4x512xf32>
    %c0_47 = arith.constant 0 : index
    %c0_48 = arith.constant 0 : index
    %142 = vector.load %arg4[%c0_47, %c0_48] : memref<4x512xf32, #tpu.memory_space<vmem>>, vector<4x512xf32>
    tpu.vector_store %arg4[%c0_47, %c0_48], %141 {strides = array<i32>} : memref<4x512xf32, #tpu.memory_space<vmem>>, vector<4x512xf32>,
    return
  }
  func.func @transform_0(%arg0: i32) -> (i32, i32) {
    %c0_i32 = arith.constant 0 : i32
    %c0_i32_0 = arith.constant 0 : i32
    return %c0_i32, %arg0 : i32, i32
  }
  func.func @transform_1(%arg0: i32) -> (i32, i32) {
    %c0_i32 = arith.constant 0 : i32
    %c0_i32_0 = arith.constant 0 : i32
    %c0_i32_1 = arith.constant 0 : i32
    return %c0_i32, %c0_i32_0 : i32, i32
  }
  func.func @transform_2(%arg0: i32) -> (i32, i32) {
    %c0_i32 = arith.constant 0 : i32
    %c0_i32_0 = arith.constant 0 : i32
    %c0_i32_1 = arith.constant 0 : i32
    return %c0_i32, %c0_i32_0 : i32, i32
  }
  func.func @transform_3(%arg0: i32) -> (i32, i32) {
    %c0_i32 = arith.constant 0 : i32
    %c0_i32_0 = arith.constant 0 : i32
    return %c0_i32, %arg0 : i32, i32
  }
}

</mosaic_0001>

<bundles_post_ra>
// kernel: tpu_custom_call.1
= control target key start
LH: loop header
LB: loop body
LE: loop exit
PB: predicated region body
PF: predicated region fallthrough
CT: control target
= control target key end

     0   :  { %8 = vsyncpa [#allocation3], 0  ;;  %s1949_s0 = inlined_call_operand.hbm [shape: f32[4,1024], index: 0, kind: input, shape index: {}]   ;;  %s1950_s1 = inlined_call_operand.hbm [shape: f32[74,512], index: 1, kind: input, shape index: {}]   ;;  %s1951_s2 = inlined_call_operand.hbm [shape: f32[8,22], index: 2, kind: input, shape index: {}]   ;;  %s1952_s3 = inlined_call_operand.hbm [shape: f32[4,1024], index: 3, kind: output, shape index: {}]  }
   0x1   :  { %10 = vsyncpa [#allocation3 + $0x1], 0 }
   0x2   :  { %11 = vsyncpa [#allocation6], 0 }
   0x3   :  { %12 = vsyncpa [#allocation4], 0 }
   0x4   :  { %14 = vsyncpa [#allocation4 + $0x1], 0  ;;  %s1433_s12 = smov 0   ;;  %s1435_s13 = smov 0  }
   0x5   :  { %s1437_s14 = smov 0   ;;  %s1439_s15 = smov 0  }
   0x6 LB: > { %s1454_s16 = sadd.s32 4294967295, %s1388_s15   ;;  %s1080_s17 = sadd.s32 4294967294, %s1388_s15   ;;  %s1388_s15 = sphi %s1439_s15, %s1972_s15   ;;  %s1384_s14 = sphi %s1437_s14, %s1971_s14   ;;  %s1380_s13 = sphi %s1435_s13, %s1970_s13   ;;  %s1376_s12 = sphi %s1433_s12, %s1969_s12  }
   0x7   : > { %p40_p0 = scmp.ne.s32.totalorder %s1380_s13, %s1376_s12  ;;  %p1953_p1 = scmp.eq.s32.totalorder %s1454_s16, 0 }
   0x8   : > { %p112_p3 = scmp.eq.s32.totalorder %s1080_s17, 1  ;;  %p1081_p5 = scmp.ge.s32.totalorder %s1388_s15, 1 }
   0x9   : > { %p1463_p4 = por %p1953_p1, %p40_p0  ;;  %p119_p7 = scmp.lt.s32.totalorder %s1388_s15, 3 }
   0xa   : > { %p1468_p6 = por %p112_p3, %p40_p0  ;;  %s1390_s21 = smov [#allocation5]  }
   0xb   : > { %s1956_s18 = scalar_select %p1463_p4, 1, 0 }
   0xc   : > { %s1957_s19 = scalar_select %p1468_p6, 1, 0 }
   0xd   : > { %p1473_p8 = pnand %p1081_p5, %p119_p7  ;;  %s131_s22 = sshll.u32 %s1390_s21, 4  ;;  %s1477_s22 = int_to_ptr.vmem [resolvable:$true] %s131_s22 }
   0xe   : > { %s1391_s24 = smov [#allocation7]   ;;  %s1232_s28 = scalar_lea.hbm %s1950_s1, 5120 }
   0xf   : > { %p1122_p9 = pneg %p1473_p8  ;;  %s145_s25 = sshll.u32 %s1391_s24, 4  ;;  %s1488_s25 = int_to_ptr.vmem [resolvable:$true] %s145_s25 }
  0x10   : > { %p1233_p12 = scmp.ne.s32.totalorder %s1950_s1, %s1232_s28  ;;  %p1239_p5 = scmp.lt.u32.totalorder %s1232_s28, %s1950_s1 }
  0x11   : > { %p1484_p11 = pnand %p1122_p9, %p1953_p1 }
  0x13   : > { %p1234_p13 = pneg %p1484_p11 }
  0x15   : > { %p1235_p0 = pnand %p1234_p13, %p1233_p12 }
  0x17   : > { %p1236_p3 = pneg %p1235_p0 }
  0x19   : > { %p1241_p7 = pnand %p1239_p5, %p1236_p3 }
  0x1b   : > { %1244 = shalt.err (!%p1241_p7)
}
  0x1c   : > { %s1245_s6 = scalar_lea.vmem %s1477_s22, 5120  ;;  %p1253_p2 = scmp.lt.s32.totalorder %s1477_s22, %s1477_s22 }
  0x1d   : > { %p1246_p9 = scmp.ne.s32.totalorder %s1477_s22, %s1245_s6  ;;  %p1254_p12 = scmp.lt.s32.totalorder %s1245_s6, %s1245_s6 }
  0x1f   : > { %p1248_p10 = pnand %p1246_p9, %p1234_p13  ;;  %p1255_p0 = por %p1254_p12, %p1253_p2 }
  0x21   : > { %p1249_p1 = pneg %p1248_p10 }
  0x23   : > { %p1256_p6 = pnand %p1255_p0, %p1249_p1 }
  0x25   : > { %1259 = shalt.err (!%p1256_p6)
}
  0x26   : > { %s1392_s7 = smov 512   ;;  %s1393_s8 = smov 32  }
  0x27   : > { %1125 = dma.hbm_to_vmem [thread:$0]  (!%p1484_p11), %s1950_s1, 5120, %s1477_s22, [#allocation6], %s1392_s7, %s1392_s7, %s1393_s8  }
  0x28   : > { %s1260_s21 = scalar_lea.hbm %s1951_s2, 128 }
  0x29   : > { %p1261_p2 = scmp.ne.s32.totalorder %s1951_s2, %s1260_s21  ;;  %p1267_p10 = scmp.lt.u32.totalorder %s1260_s21, %s1951_s2 }
  0x2b   : > { %p1263_p1 = pnand %p1261_p2, %p1234_p13 }
  0x2d   : > { %p1264_p6 = pneg %p1263_p1 }
  0x2f   : > { %p1269_p3 = pnand %p1267_p10, %p1264_p6 }
  0x31   : > { %1272 = shalt.err (!%p1269_p3)
}
  0x32   : > { %s1273_s22 = scalar_lea.vmem %s1488_s25, 128  ;;  %p1281_p12 = scmp.lt.s32.totalorder %s1488_s25, %s1488_s25 }
  0x33   : > { %p1274_p5 = scmp.ne.s32.totalorder %s1488_s25, %s1273_s22  ;;  %p1282_p0 = scmp.lt.s32.totalorder %s1273_s22, %s1273_s22 }
  0x35   : > { %p1276_p7 = pnand %p1274_p5, %p1234_p13  ;;  %p1283_p2 = por %p1282_p0, %p1281_p12 }
  0x37   : > { %p1277_p9 = pneg %p1276_p7 }
  0x39   : > { %p1284_p1 = pnand %p1283_p2, %p1277_p9 }
  0x3b   : > { %1287 = shalt.err (!%p1284_p1)
}
  0x3c   : > { %1128 = dma.hbm_to_vmem [thread:$0]  (!%p1484_p11), %s1951_s2, 128, %s1488_s25, [#allocation6]  }
  0x3d   : > { %s1543_s4 = sadd.s32 1, %s1388_s15   ;;  %s27_s23 = sadd.s32 1, %s1384_s14 }
  0x3e   : > { %s24_s5 = ssub.s32 %s1388_s15, %s1543_s4  ;;  %p34_p13 = scmp.ne.s32.totalorder %s1384_s14, %s1380_s13 }
  0x3f   : > { %p25_p6 = scmp.eq.s32.totalorder %s24_s5, 0  ;;  %p35_p10 = scmp.eq.s32.totalorder %s1388_s15, 0 }
  0x40   : > { %p1960_p3 = scmp.eq.s32.totalorder %s1454_s16, 1  ;;  %p1139_p7 = scmp.lt.s32.totalorder %s1388_s15, 2 }
  0x41   : > { %s1559_s7 = scalar_select %p25_p6, %s1384_s14, %s27_s23  }
  0x42   : > { %p1553_p5 = por %p1960_p3, %p34_p13  ;;  %p36_p9 = por %p35_p10, %p34_p13 }
  0x43   : > { %s156_s8 = sand.u32 1, %s1384_s14   ;;  %s1108_s25 = sshll.u32 %s1388_s15, 8 }
  0x44   : > { %s1961_s6 = scalar_select %p1553_p5, 1, 0 }
  0x45   : > { %s1085_s9 = sshll.u32 %s156_s8, 4  ;;  %s1566_s17 = scalar_lea.hbm %s1949_s0, %s1108_s25 }
  0x46   : > { %s160_s21 = scalar_lea.vmem [#allocation2], %s1085_s9  ;;  %p1570_p11 = pnand %p1139_p7, %p36_p9 }
  0x47   : > { %s168_s24 = sshll.u32 %s160_s21, 4  ;;  %s157_s27 = scalar_lea.sflag [#allocation3], %s156_s8  ;;  %s1568_s24 = int_to_ptr.vmem [resolvable:$true] %s168_s24 }
  0x48   : > { %s1288_s28 = scalar_lea.hbm %s1566_s17, 256  ;;  %p1290_p0 = pneg %p1570_p11 }
  0x49   : > { %p1289_p12 = scmp.ne.s32.totalorder %s1566_s17, %s1288_s28  ;;  %s1293_s30 = scalar_lea.hbm %s1949_s0, 512 }
  0x4a   : > { %p1294_p13 = scmp.lt.u32.totalorder %s1566_s17, %s1949_s0  ;;  %p1295_p6 = scmp.lt.u32.totalorder %s1293_s30, %s1288_s28 }
  0x4b   : > { %p1291_p2 = pnand %p1290_p0, %p1289_p12  ;;  %p1297_p3 = scmp.lt.u32.totalorder %s1288_s28, %s1566_s17 }
  0x4c   : > { %p1296_p10 = por %p1295_p6, %p1294_p13 }
  0x4d   : > { %p1292_p1 = pneg %p1291_p2 }
  0x4e   : > { %p1298_p7 = por %p1297_p3, %p1296_p10 }
  0x50   : > { %p1299_p9 = pnand %p1298_p7, %p1292_p1 }
  0x52   : > { %1302 = shalt.err (!%p1299_p9)
}
  0x53   : > { %s1303_s8 = scalar_lea.vmem %s1568_s24, 256  ;;  %s1394_s9 = smov [#allocation2]  }
  0x54   : > { %p1304_p12 = scmp.ne.s32.totalorder %s1568_s24, %s1303_s8  ;;  %s1308_s25 = sshll.u32 %s1394_s9, 4  ;;  %s1309_s25 = int_to_ptr.vmem [resolvable:$false] %s1308_s25 }
  0x55   : > { %s1310_s10 = scalar_lea.vmem %s1309_s25, 512  ;;  %p1311_p4 = scmp.lt.s32.totalorder %s1568_s24, %s1309_s25 }
  0x56   : > { %p1306_p2 = pnand %p1304_p12, %p1290_p0  ;;  %p1312_p13 = scmp.lt.s32.totalorder %s1310_s10, %s1303_s8 }
  0x58   : > { %p1307_p5 = pneg %p1306_p2  ;;  %p1313_p6 = por %p1312_p13, %p1311_p4 }
  0x5a   : > { %p1314_p10 = pnand %p1313_p6, %p1307_p5 }
  0x5c   : > { %1317 = shalt.err (!%p1314_p10)
}
  0x5d   : > { %1132 = dma.hbm_to_vmem [thread:$0]  (!%p1570_p11), %s1566_s17, 256, %s1568_s24, %s157_s27  }
  0x5e   : > { %177 = sbr.rel (%p1473_p8) target bundleno = 1499 (0x5db), region = 32  ;;  %s1602_s11 = sand.u32 (!%p1473_p8), 1, %s1380_s13  }
  0x5f   : > { %s1089_s21 = sshll.u32 (!%p1473_p8), %s1602_s11, 4  ;;  %s180_s28 = scalar_lea.sflag (!%p1473_p8), [#allocation3], %s1602_s11 }
  0x60   : > { %s183_s22 = scalar_lea.vmem (!%p1473_p8), [#allocation2], %s1089_s21  ;;  %p1963_p4 = scmp.ne.s32.totalorder (!%p1473_p8), %s1956_s18, 0 }
  0x65   : > { %1363 = dma.done.wait (%p1963_p4), %s180_s28, 256  }
  0x66   : > { %1365 = vsyncadd (%p1963_p4), %s180_s28, 4294967040  ;;  %p1964_p5 = scmp.eq.s32.totalorder %s1454_s16, 0 }
  0x68   : > { %1367 = dma.done.wait (%p1964_p5), [#allocation6], 5248   ;;  %p1965_p8 = pmov %p1964_p5 }
  0x69   : > { %v1395_v0 = vmov 0.0   ;;  %v1396_v1 = vmov 4   ;;  %v219_v2 = vld [vmem:[%s183_s22] sm:$0xff]  ;;  %vm233_vm0 = vcmask 1043456   ;;  %v220_v3 = vld [vmem:[%s183_s22 + $0x8] sm:$0xff]  ;;  %vm230_vm1 = vcmask 31744  }
  0x6a   : > { %1369 = vsyncadd (%p1965_p8), [#allocation6], 4294962048  ;;  %306 = vmatprep.mubr.f32.mxu0 %v1395_v0  ;;  %377 = vmatprep.mubr.f32.mxu1 %v1395_v0  ;;  %v1616_v4 = vld [vmem:[#allocation7] sm:$0xff]  ;;  %v228_v5 = vcombine.high %v219_v2, %v219_v2  ;;  %v229_v6 = vcombine.high %v220_v3, %v220_v3  ;;  %v1397_v7 = vmov 5   ;;  %s1398_s18 = smov 15   ;;  %s1399_s20 = smov 17   ;;  %v412_v54 = vlaneseq }
  0x6b   : > { %1196 = vset.pattern.permute.xlu0 %v1396_v1  ;;  %1197 = vset.pattern.permute.xlu1 %v1397_v7  ;;  %s1400_s17 = smov 127   ;;  %s1401_s24 = smov 16   ;;  %v490_v60 = vld [vmem:[#allocation5 + $0x80] sm:$0xff]  ;;  %v491_v61 = vld [vmem:[#allocation5 + $0x88] sm:$0xff]  ;;  %v492_v62 = vld [vmem:[#allocation5 + $0x90] sm:$0xff]  ;;  %vm676_vm10 = vcmask 64560  }
  0x6c   : > { %223 = vperm.xlu0 %1196, %v1616_v4   ;;  %1093 = vmatprep.subr.msk.mxu0 %vm233_vm0, %v228_v5  ;;  %s1402_s26 = smov 1   ;;  %s1403_s27 = smov 112   ;;  %v1715_v57 = vand.u32 127, %v412_v54  ;;  %v419_v63 = vld [vmem:[#allocation5] sm:$0xff]  ;;  %v443_v5 = vld [vmem:[#allocation5 + $0x38] sm:$0xff]  ;;  %vm707_vm11 = vcmask 15360  }
  0x6d   : > { %1096 = vmatprep.subr.msk.mxu1 %vm233_vm0, %v229_v6  ;;  %1094 = vmatpush1.msk.msra.mxu0 %vm233_vm0, %v219_v2  ;;  %s1404_s29 = smov 113   ;;  %s1405_s30 = smov 111   ;;  %vm821_vm12 = vcmask 64512  }
  0x6e   : > { %1097 = vmatpush1.msk.msra.mxu1 %vm233_vm0, %v220_v3  ;;  %1095 = vmatmul.mubr.msk.f32.vlgmr.msra.gmra.mrb[0].mxu0 %vm230_vm1, %v1616_v4  ;;  %vm435_vm2 = vcmp.lt.s32.totalorder %v1715_v57, 16  ;;  %vm414_vm3 = vcmp.lt.s32.totalorder %v1715_v57, 17  ;;  %v440_v3 = vld [vmem:[#allocation5 + $0x20] sm:$0xff]  ;;  %vm477_vm4 = vcmp.lt.s32.totalorder %v1715_v57, 1  ;;  %vm456_vm5 = vcmp.lt.s32.totalorder %v1715_v57, 15  ;;  %s1406_s23 = smov 126  }
  0x6f   : > { %1098 = vmatmul.mubr.msk.f32.vlgmr.msra.gmra.mrb[0].mxu1 %vm230_vm1, %v1616_v4  ;;  %888 = vmatprep.mubr.f32.mxu0 %v1395_v0  ;;  %vm506_vm6 = vcmp.lt.s32.totalorder %v1715_v57, 127  ;;  %vm527_vm7 = vcmp.lt.s32.totalorder %v1715_v57, 113  ;;  %vm548_vm8 = vcmp.lt.s32.totalorder %v1715_v57, 112  ;;  %vm569_vm9 = vcmp.lt.s32.totalorder %v1715_v57, 111  ;;  %s1407_s5 = smov 4   ;;  %s1408_s8 = smov 118  }
  0x70   : > { %959 = vmatprep.mubr.f32.mxu1 %v1395_v0  ;;  %615 = vperm.xlu1 %1197, %v1616_v4   ;;  %v422_v0 = vld [vmem:[#allocation5 + $0x18] sm:$0xff]  ;;  %s1410_s9 = smov 115   ;;  %s1109_s25 = sshll.u32 %s1454_s16, 8 }
  0x71   : > { %s213_s10 = scalar_lea.vmem [#allocation8], %s1089_s21  ;;  %s977_s16 = scalar_lea.sflag [#allocation4], %s1602_s11 }
  0x72   : > { %s991_s28 = sshll.u32 %s213_s10, 4  ;;  %p1966_p0 = scmp.ne.s32.totalorder %s1961_s6, 0  ;;  %s1907_s28 = int_to_ptr.vmem [resolvable:$true] %s991_s28 }
  0x73   : > { %s1412_s21 = smov [#allocation8]  }
  0xeb   : > { %v224_v8 = vpop.permute.xlu0 %223 }
  0xef   : > { %v1690_v37 = vpop.permute.xlu1 %615 }
 0x141   : > { %v308_v9 = vpop.f32.mrb[0].mxu0 }
 0x142   : > { %v379_v10 = vpop.f32.mrb[0].mxu1  ;;  %v309_v11 = vadd.f32 %v308_v9, %v224_v8  ;;  %v310_v13 = vpop.f32.mrb[1].mxu0 }
 0x143   : > { %v380_v12 = vadd.f32 %v379_v10, %v224_v8  ;;  %v381_v14 = vpop.f32.mrb[1].mxu1  ;;  %v311_v22 = vadd.f32 %v310_v13, %v224_v8 }
 0x144   : > { %v388_v15 = vmul.f32 0.70710677, %v309_v11  ;;  %v384_v18 = vmul.f32 0.5, %v309_v11  ;;  %v382_v26 = vadd.f32 %v381_v14, %v224_v8  ;;  %v420_v14 = vld [vmem:[#allocation5 + $0x8] sm:$0xff] }
 0x145   : > { %v390_v16 = vmul.f32 0.70710677, %v380_v12  ;;  %v386_v24 = vmul.f32 0.5, %v380_v12  ;;  %v389_v25 = vmul.f32 0.70710677, %v311_v22  ;;  %v385_v32 = vmul.f32 0.5, %v311_v22 }
 0x146   : > { %1204 = verf.f32 %v388_v15  ;;  %v391_v28 = vmul.f32 0.70710677, %v382_v26  ;;  %v387_v35 = vmul.f32 0.5, %v382_v26  ;;  %v493_v12 = vld [vmem:[#allocation5 + $0x98] sm:$0xff]  ;;  %v421_v15 = vld [vmem:[#allocation5 + $0x10] sm:$0xff] }
 0x147   : > { %1206 = verf.f32 %v390_v16 }
 0x148   : > { %1208 = verf.f32 %v389_v25 }
 0x149   : > { %1210 = verf.f32 %v391_v28 }
 0x150   : > { %v1205_v17 = vpop.eup %1204 }
 0x151   : > { %v396_v19 = vadd.f32 1.0, %v1205_v17  ;;  %v1207_v21 = vpop.eup %1206 }
 0x152   : > { %v398_v23 = vadd.f32 1.0, %v1207_v21  ;;  %v1209_v29 = vpop.eup %1208 }
 0x153   : > { %v1622_v20 = vmul.f32 %v396_v19, %v384_v18  ;;  %v397_v30 = vadd.f32 1.0, %v1209_v29  ;;  %v1211_v31 = vpop.eup %1210  ;;  %v441_v29 = vld [vmem:[#allocation5 + $0x28] sm:$0xff] }
 0x154   : > { %v1632_v27 = vmul.f32 %v398_v23, %v386_v24  ;;  %v399_v34 = vadd.f32 1.0, %v1211_v31  ;;  %v461_v23 = vld [vmem:[#allocation5 + $0x40] sm:$0xff] }
 0x155   : > { %448 = vrot.lane.b32.xlu1 %v1622_v20, %s1398_s18  ;;  %404 = vrot.lane.b32.xlu0 %v1622_v20, %s1399_s20  ;;  %v1654_v33 = vmul.f32 %v397_v30, %v385_v32  ;;  %v1733_v11 = vmul.f32 %v490_v60, %v1622_v20  ;;  %v482_v24 = vld [vmem:[#allocation5 + $0x60] sm:$0xff]  ;;  %v442_v30 = vld [vmem:[#allocation5 + $0x30] sm:$0xff] }
 0x156   : > { %v1659_v36 = vmul.f32 %v399_v34, %v387_v35  ;;  %v1736_v13 = vmul.f32 %v492_v62, %v1632_v27  ;;  %v462_v35 = vld [vmem:[#allocation5 + $0x48] sm:$0xff] }
 0x157   : > { %v1730_v10 = vmul.f32 %v491_v61, %v1654_v33 }
 0x158   : > { %v1752_v26 = vmul.f32 %v493_v12, %v1659_v36  ;;  %v463_v12 = vld [vmem:[#allocation5 + $0x50] sm:$0xff] }
 0x159   : > { %498 = vrot.lane.b32.xlu1 %v1622_v20, %s1400_s17  ;;  %427 = vrot.lane.b32.xlu0 %v1622_v20, %s1401_s24 }
 0x15d   : > { %502 = vrot.lane.b32.xlu1 %v1632_v27, %s1400_s17  ;;  %469 = vrot.lane.b32.xlu0 %v1622_v20, %s1402_s26 }
 0x161   : > { %540 = vrot.lane.b32.xlu1 %v1622_v20, %s1403_s27  ;;  %519 = vrot.lane.b32.xlu0 %v1622_v20, %s1404_s29 }
 0x165   : > { %544 = vrot.lane.b32.xlu1 %v1632_v27, %s1403_s27  ;;  %523 = vrot.lane.b32.xlu0 %v1632_v27, %s1404_s29 }
 0x169   : > { %431 = vrot.lane.b32.xlu1 %v1632_v27, %s1401_s24  ;;  %408 = vrot.lane.b32.xlu0 %v1632_v27, %s1399_s20 }
 0x16d   : > { %473 = vrot.lane.b32.xlu1 %v1632_v27, %s1402_s26  ;;  %452 = vrot.lane.b32.xlu0 %v1632_v27, %s1398_s18 }
 0x171   : > { %406 = vrot.lane.b32.xlu1 %v1654_v33, %s1399_s20  ;;  %561 = vrot.lane.b32.xlu0 %v1622_v20, %s1405_s30 }
 0x175   : > { %410 = vrot.lane.b32.xlu1 %v1659_v36, %s1399_s20  ;;  %433 = vrot.lane.b32.xlu0 %v1659_v36, %s1401_s24  ;;  %s1905_s20 = scalar_lea.hbm %s1952_s3, %s1109_s25 }
 0x179   : > { %429 = vrot.lane.b32.xlu1 %v1654_v33, %s1401_s24  ;;  %450 = vrot.lane.b32.xlu0 %v1654_v33, %s1398_s18  ;;  %s1322_s24 = sshll.u32 %s1412_s21, 4  ;;  %s1323_s24 = int_to_ptr.vmem [resolvable:$false] %s1322_s24 }
 0x17a   : > { %p1325_p7 = scmp.lt.s32.totalorder %s1907_s28, %s1323_s24 }
 0x17d   : > { %454 = vrot.lane.b32.xlu1 %v1659_v36, %s1398_s18  ;;  %475 = vrot.lane.b32.xlu0 %v1659_v36, %s1402_s26 }
 0x181   : > { %471 = vrot.lane.b32.xlu1 %v1654_v33, %s1402_s26  ;;  %500 = vrot.lane.b32.xlu0 %v1654_v33, %s1400_s17  ;;  %s1324_s26 = scalar_lea.vmem %s1323_s24, 512 }
 0x185   : > { %521 = vrot.lane.b32.xlu1 %v1654_v33, %s1404_s29  ;;  %542 = vrot.lane.b32.xlu0 %v1654_v33, %s1403_s27 }
 0x189   : > { %525 = vrot.lane.b32.xlu1 %v1659_v36, %s1404_s29  ;;  %504 = vrot.lane.b32.xlu0 %v1659_v36, %s1400_s17  ;;  %s1318_s17 = scalar_lea.vmem %s1907_s28, 256 }
 0x18a   : > { %p1319_p11 = scmp.ne.s32.totalorder %s1907_s28, %s1318_s17  ;;  %p1326_p9 = scmp.lt.s32.totalorder %s1324_s26, %s1318_s17 }
 0x18c   : > { %p1320_p1 = pnand %p1319_p11, %p1966_p0  ;;  %p1327_p12 = por %p1326_p9, %p1325_p7 }
 0x18d   : > { %563 = vrot.lane.b32.xlu1 %v1654_v33, %s1405_s30  ;;  %546 = vrot.lane.b32.xlu0 %v1659_v36, %s1403_s27 }
 0x18e   : > { %p1321_p3 = pneg %p1320_p1 }
 0x190   : > { %p1328_p2 = pnand %p1327_p12, %p1321_p3 }
 0x191   : > { %567 = vrot.lane.b32.xlu1 %v1659_v36, %s1405_s30  ;;  %565 = vrot.lane.b32.xlu0 %v1632_v27, %s1405_s30 }
 0x1c7   : > { %v1692_v38 = vpop.permute.xlu1 %448  ;;  %v405_v39 = vpop.permute.xlu0 %404 }
 0x1cb   : > { %v1694_v40 = vpop.permute.xlu1 %498  ;;  %v428_v41 = vpop.permute.xlu0 %427 }
 0x1cf   : > { %v1696_v42 = vpop.permute.xlu1 %502  ;;  %v1698_v43 = vpop.permute.xlu0 %469 }
 0x1d3   : > { %v1700_v44 = vpop.permute.xlu1 %540  ;;  %v1702_v45 = vpop.permute.xlu0 %519 }
 0x1d7   : > { %v1704_v46 = vpop.permute.xlu1 %544  ;;  %v1706_v47 = vpop.permute.xlu0 %523 }
 0x1db   : > { %v432_v48 = vpop.permute.xlu1 %431  ;;  %v409_v49 = vpop.permute.xlu0 %408 }
 0x1df   : > { %v1708_v50 = vpop.permute.xlu1 %473  ;;  %v1710_v51 = vpop.permute.xlu0 %452 }
 0x1e3   : > { %v407_v52 = vpop.permute.xlu1 %406  ;;  %v1712_v53 = vpop.permute.xlu0 %561 }
 0x1e4   : > { %v416_v16 = vsel %vm414_vm3, %v407_v52, %v409_v49  ;;  %v417_v17 = vsel %vm414_vm3, %v405_v39, %v407_v52 }
 0x1e5   : > { %v424_v27 = vmul.f32 %v420_v14, %v417_v17  ;;  %v425_v28 = vmul.f32 %v421_v15, %v416_v16 }
 0x1e7   : > { %v411_v55 = vpop.permute.xlu1 %410  ;;  %v434_v56 = vpop.permute.xlu0 %433 }
 0x1e8   : > { %v415_v1 = vsel %vm414_vm3, %v409_v49, %v411_v55  ;;  %v418_v2 = vsel %vm414_vm3, %v411_v55, %v405_v39  ;;  %v436_v6 = vsel %vm435_vm2, %v432_v48, %v434_v56  ;;  %v439_v7 = vsel %vm435_vm2, %v434_v56, %v428_v41  ;;  %v464_v49 = vld [vmem:[#allocation5 + $0x58] sm:$0xff] }
 0x1e9   : > { %v423_v18 = vmul.f32 %v419_v63, %v418_v2  ;;  %v426_v19 = vmul.f32 %v422_v0, %v415_v1  ;;  %v444_v21 = vmul.f32 %v440_v3, %v439_v7  ;;  %v447_v22 = vmul.f32 %v443_v5, %v436_v6  ;;  %v511_v0 = vld [vmem:[#allocation5 + $0xa0] sm:$0xff]  ;;  %v484_v5 = vld [vmem:[#allocation5 + $0x70] sm:$0xff]  ;;  %v512_v7 = vld [vmem:[#allocation5 + $0xa8] sm:$0xff] }
 0x1eb   : > { %v430_v58 = vpop.permute.xlu1 %429  ;;  %v451_v59 = vpop.permute.xlu0 %450  ;;  %v582_v56 = vadd.f32 %v444_v21, %v423_v18  ;;  %v1764_v60 = vadd.f32 %v447_v22, %v426_v19  ;;  %v553_v18 = vld [vmem:[#allocation5 + $0xe0] sm:$0xff] }
 0x1ec   : > { %v437_v31 = vsel %vm435_vm2, %v430_v58, %v432_v48  ;;  %v438_v32 = vsel %vm435_vm2, %v428_v41, %v430_v58  ;;  %v459_v39 = vsel %vm456_vm5, %v1692_v38, %v451_v59  ;;  %v458_v41 = vsel %vm456_vm5, %v451_v59, %v1710_v51  ;;  %v485_v48 = vld [vmem:[#allocation5 + $0x78] sm:$0xff]  ;;  %v533_v59 = vld [vmem:[#allocation5 + $0xc8] sm:$0xff] }
 0x1ed   : > { %v445_v61 = vmul.f32 %v441_v29, %v438_v32  ;;  %v446_v62 = vmul.f32 %v442_v30, %v437_v31  ;;  %v466_v2 = vmul.f32 %v462_v35, %v459_v39  ;;  %v467_v31 = vmul.f32 %v463_v12, %v458_v41 }
 0x1ef   : > { %v455_v8 = vpop.permute.xlu1 %454  ;;  %v476_v9 = vpop.permute.xlu0 %475  ;;  %v583_v30 = vadd.f32 %v445_v61, %v424_v27  ;;  %v584_v39 = vadd.f32 %v446_v62, %v425_v28 }
 0x1f0   : > { %v460_v20 = vsel %vm456_vm5, %v455_v8, %v1692_v38  ;;  %v481_v25 = vsel %vm477_vm4, %v476_v9, %v1698_v43  ;;  %v457_v36 = vsel %vm456_vm5, %v1710_v51, %v455_v8  ;;  %v478_v58 = vsel %vm477_vm4, %v1708_v50, %v476_v9  ;;  %v483_v38 = vld [vmem:[#allocation5 + $0x68] sm:$0xff]  ;;  %v532_v51 = vld [vmem:[#allocation5 + $0xc0] sm:$0xff] }
 0x1f1   : > { %v465_v52 = vmul.f32 %v461_v23, %v460_v20  ;;  %v486_v55 = vmul.f32 %v482_v24, %v481_v25  ;;  %v468_v3 = vmul.f32 %v464_v49, %v457_v36  ;;  %v489_v14 = vmul.f32 %v485_v48, %v478_v58  ;;  %v513_v36 = vld [vmem:[#allocation5 + $0xb0] sm:$0xff] }
 0x1f3   : > { %v472_v33 = vpop.permute.xlu1 %471  ;;  %v501_v34 = vpop.permute.xlu0 %500  ;;  %v586_v15 = vadd.f32 %v486_v55, %v465_v52  ;;  %v589_v49 = vadd.f32 %v489_v14, %v468_v3  ;;  %v514_v52 = vld [vmem:[#allocation5 + $0xb8] sm:$0xff] }
 0x1f4   : > { %v480_v63 = vsel %vm477_vm4, %v1698_v43, %v472_v33  ;;  %v509_v1 = vsel %vm506_vm6, %v1694_v40, %v501_v34  ;;  %v479_v6 = vsel %vm477_vm4, %v472_v33, %v1708_v50  ;;  %v508_v8 = vsel %vm506_vm6, %v501_v34, %v1696_v42  ;;  %v554_v50 = vld [vmem:[#allocation5 + $0xe8] sm:$0xff] }
 0x1f5   : > { %v487_v19 = vmul.f32 %v483_v38, %v480_v63  ;;  %v515_v21 = vmul.f32 %v511_v0, %v509_v1  ;;  %v488_v20 = vmul.f32 %v484_v5, %v479_v6  ;;  %v516_v24 = vmul.f32 %v512_v7, %v508_v8  ;;  %v534_v38 = vld [vmem:[#allocation5 + $0xd0] sm:$0xff]  ;;  %v574_v1 = vld [vmem:[#allocation5 + $0x100] sm:$0xff]  ;;  %v556_v6 = vld [vmem:[#allocation5 + $0xf8] sm:$0xff] }
 0x1f6   : > { %v598_v61 = vadd.f32 %v586_v15, %v582_v56 }
 0x1f7   : > { %v522_v43 = vpop.permute.xlu1 %521  ;;  %v543_v9 = vpop.permute.xlu0 %542  ;;  %v590_v58 = vadd.f32 %v515_v21, %v1733_v11  ;;  %v587_v62 = vadd.f32 %v487_v19, %v466_v2  ;;  %v588_v63 = vadd.f32 %v488_v20, %v467_v31  ;;  %v591_v0 = vadd.f32 %v516_v24, %v1730_v10  ;;  %v576_v20 = vld [vmem:[#allocation5 + $0x110] sm:$0xff]  ;;  %v577_v31 = vld [vmem:[#allocation5 + $0x118] sm:$0xff] }
 0x1f8   : > { %v529_v16 = vsel %vm527_vm7, %v522_v43, %v1706_v47  ;;  %v530_v17 = vsel %vm527_vm7, %v1702_v45, %v522_v43  ;;  %v550_v25 = vsel %vm548_vm8, %v543_v9, %v1704_v46  ;;  %v551_v29 = vsel %vm548_vm8, %v1700_v44, %v543_v9 }
 0x1f9   : > { %v536_v22 = vmul.f32 %v532_v51, %v530_v17  ;;  %v537_v23 = vmul.f32 %v533_v59, %v529_v16  ;;  %v557_v32 = vmul.f32 %v553_v18, %v551_v29  ;;  %v558_v33 = vmul.f32 %v554_v50, %v550_v25  ;;  %v535_v59 = vld [vmem:[#allocation5 + $0xd8] sm:$0xff]  ;;  %v575_v17 = vld [vmem:[#allocation5 + $0x108] sm:$0xff] }
 0x1fa   : > { %v599_v12 = vadd.f32 %v587_v62, %v583_v30  ;;  %v600_v14 = vadd.f32 %v588_v63, %v584_v39  ;;  %v728_v62 = vld [vmem:[#allocation5 + $0x121] ss:$8 sm:$0xf] }
 0x1fb   : > { %v526_v34 = vpop.permute.xlu1 %525  ;;  %v505_v35 = vpop.permute.xlu0 %504  ;;  %v594_v27 = vadd.f32 %v557_v32, %v536_v22  ;;  %v595_v41 = vadd.f32 %v558_v33, %v537_v23  ;;  %v601_v32 = vadd.f32 %v589_v49, %v1764_v60  ;;  %v646_v49 = vshrl.u32 %v412_v54, 7 }
 0x1fc   : > { %v507_v55 = vsel %vm506_vm6, %v1696_v42, %v505_v35  ;;  %v510_v48 = vsel %vm506_vm6, %v505_v35, %v1694_v40  ;;  %v528_v28 = vsel %vm527_vm7, %v1706_v47, %v526_v34  ;;  %v555_v42 = vld [vmem:[#allocation5 + $0xf0] sm:$0xff]  ;;  %v531_v40 = vsel %vm527_vm7, %v526_v34, %v1702_v45 }
 0x1fd   : > { %v602_v51 = vadd.f32 %v594_v27, %v590_v58  ;;  %v517_v11 = vmul.f32 %v513_v36, %v507_v55  ;;  %v518_v3 = vmul.f32 %v514_v52, %v510_v48  ;;  %v603_v8 = vadd.f32 %v595_v41, %v591_v0 }
 0x1fe   : > { %v538_v47 = vmul.f32 %v534_v38, %v528_v28  ;;  %v539_v15 = vmul.f32 %v535_v59, %v531_v40  ;;  %v651_v0 = vsub.s32 1, %v646_v49  ;;  %v659_v59 = vsub.s32 3, %v646_v49 }
 0x1ff   : > { %v564_v5 = vpop.permute.xlu1 %563  ;;  %v547_v7 = vpop.permute.xlu0 %546  ;;  %v606_v43 = vadd.f32 %v602_v51, %v598_v61  ;;  %v592_v18 = vadd.f32 %v517_v11, %v1736_v13  ;;  %v593_v50 = vadd.f32 %v518_v3, %v1752_v26  ;;  %v607_v24 = vadd.f32 %v603_v8, %v599_v12 }
 0x200   : > { %v572_v56 = vsel %vm569_vm9, %v1712_v53, %v564_v5  ;;  %v549_v10 = vsel %vm548_vm8, %v1704_v46, %v547_v7  ;;  %v552_v45 = vsel %vm548_vm8, %v547_v7, %v1700_v44  ;;  %v1835_v61 = vsub.s32 0, %v646_v49 }
 0x201   : > { %v578_v2 = vmul.f32 %v574_v1, %v572_v56  ;;  %v559_v9 = vmul.f32 %v555_v42, %v549_v10  ;;  %v560_v16 = vmul.f32 %v556_v6, %v552_v45  ;;  %v643_v1 = vld [vmem:[#allocation5 + $0x120] ss:$8 sm:$0xf]  ;;  %v655_v51 = vsub.s32 2, %v646_v49 }
 0x202   : > { %v1843_v3 = vrot.slane %v643_v1, %v1835_v61  ;;  %v1845_v6 = vrot.slane %v728_v62, %v651_v0  ;;  %v1847_v7 = vrot.slane %v643_v1, %v651_v0  ;;  %v1851_v56 = vrot.slane %v728_v62, %v659_v59 }
 0x203   : > { %v610_v19 = vadd.f32 %v606_v43, %v578_v2  ;;  %v596_v21 = vadd.f32 %v559_v9, %v538_v47  ;;  %v568_v22 = vpop.permute.xlu1 %567  ;;  %v566_v46 = vpop.permute.xlu0 %565  ;;  %v597_v23 = vadd.f32 %v560_v16, %v539_v15  ;;  %v1849_v47 = vrot.slane %v728_v62, %v655_v51 }
 0x204   : > { %v570_v44 = vsel %vm569_vm9, %v566_v46, %v568_v22  ;;  %v571_v25 = vsel %vm569_vm9, %v564_v5, %v566_v46  ;;  %v573_v13 = vsel %vm569_vm9, %v568_v22, %v1712_v53  ;;  %v1855_v9 = vrot.slane %v643_v1, %v655_v51 }
 0x205   : > { %v618_v29 = vadd.f32 %v1690_v37, %v610_v19  ;;  %v604_v30 = vadd.f32 %v596_v21, %v592_v18  ;;  %v579_v26 = vmul.f32 %v575_v17, %v571_v25  ;;  %v605_v33 = vadd.f32 %v597_v23, %v593_v50 }
 0x206   : > { %v580_v39 = vmul.f32 %v576_v20, %v570_v44  ;;  %v581_v52 = vmul.f32 %v577_v31, %v573_v13  ;;  %v1859_v16 = vrot.slane %v643_v1, %v659_v59  ;;  %v217_v13 = vld [vmem:[#allocation7] sm:$0x1] }
 0x207   : > { %v626_v34 = vmul.f32 0.70710677, %v618_v29  ;;  %v608_v35 = vadd.f32 %v604_v30, %v600_v14  ;;  %v611_v36 = vadd.f32 %v607_v24, %v579_v26  ;;  %v609_v55 = vadd.f32 %v605_v33, %v601_v32 }
 0x208   : > { %v622_v42 = vmul.f32 0.5, %v618_v29 }
 0x209   : > { %1212 = verf.f32 %v626_v34  ;;  %v612_v48 = vadd.f32 %v608_v35, %v580_v39  ;;  %v619_v58 = vadd.f32 %v1690_v37, %v611_v36  ;;  %v613_v27 = vadd.f32 %v609_v55, %v581_v52 }
 0x20b   : > { %v620_v41 = vadd.f32 %v1690_v37, %v612_v48  ;;  %v627_v38 = vmul.f32 0.70710677, %v619_v58  ;;  %v621_v53 = vadd.f32 %v1690_v37, %v613_v27  ;;  %v1840_v37 = vrot.slane %v728_v62, %v1835_v61 }
 0x20c   : > { %v623_v54 = vmul.f32 0.5, %v619_v58 }
 0x20d   : > { %v628_v57 = vmul.f32 0.70710677, %v620_v41  ;;  %1214 = verf.f32 %v627_v38  ;;  %v629_v60 = vmul.f32 0.70710677, %v621_v53  ;;  %v624_v2 = vmul.f32 0.5, %v620_v41 }
 0x20e   : > { %v625_v12 = vmul.f32 0.5, %v621_v53 }
 0x20f   : > { %1216 = verf.f32 %v628_v57 }
 0x210   : > { %1218 = verf.f32 %v629_v60 }
 0x213   : > { %v1213_v28 = vpop.eup %1212 }
 0x214   : > { %v634_v63 = vadd.f32 1.0, %v1213_v28 }
 0x216   : > { %v1837_v11 = vmul.f32 %v634_v63, %v622_v42 }
 0x217   : > { %v1215_v40 = vpop.eup %1214 }
 0x218   : > { %v635_v5 = vadd.f32 1.0, %v1215_v40  ;;  %v750_v15 = vmul.f32 %v1840_v37, %v1837_v11  ;;  %v665_v50 = vmul.f32 %v1843_v3, %v1837_v11 }
 0x219   : > { %v1217_v8 = vpop.eup %1216 }
 0x21a   : > { %v1219_v10 = vpop.eup %1218  ;;  %v1853_v43 = vmul.f32 %v635_v5, %v623_v54  ;;  %v636_v45 = vadd.f32 1.0, %v1217_v8 }
 0x21b   : > { %v637_v14 = vadd.f32 1.0, %v1219_v10 }
 0x21c   : > { %v1861_v17 = vmul.f32 %v636_v45, %v624_v2  ;;  %v751_v18 = vmul.f32 %v1845_v6, %v1853_v43  ;;  %v666_v19 = vmul.f32 %v1847_v7, %v1853_v43 }
 0x21d   : > { %v1869_v21 = vmul.f32 %v637_v14, %v625_v12 }
 0x21e   : > { %v752_v22 = vmul.f32 %v1849_v47, %v1861_v17  ;;  %v754_v46 = vadd.f32 %v751_v18, %v750_v15  ;;  %v667_v23 = vmul.f32 %v1855_v9, %v1861_v17  ;;  %v669_v20 = vadd.f32 %v666_v19, %v665_v50 }
 0x21f   : > { %v753_v24 = vmul.f32 %v1851_v56, %v1869_v21  ;;  %v668_v25 = vmul.f32 %v1859_v16, %v1869_v21 }
 0x220   : > { %v755_v44 = vadd.f32 %v754_v46, %v752_v22  ;;  %v670_v29 = vadd.f32 %v669_v20, %v667_v23 }
 0x222   : > { %v756_v30 = vadd.f32 %v755_v44, %v753_v24  ;;  %v671_v31 = vadd.f32 %v670_v29, %v668_v25 }
 0x224   : > { %757 = vadd.xlane.f32.xlu1 %v756_v30  ;;  %672 = vadd.xlane.f32.xlu0 %v671_v31 }
 0x23a   : > { %685 = vrot.lane.b32.xlu0 %v217_v13, %s1406_s23 }
 0x2b1   : > { %v758_v26 = vpop.xlane.xlu1 %757  ;;  %v673_v32 = vpop.xlane.xlu0 %672 }
 0x2b2   : > { %v759_v33 = vmul.f32 0.00390625, %v758_v26  ;;  %v674_v34 = vmul.f32 0.00390625, %v673_v32 }
 0x2b4   : > { %v760_v35 = vmul.f32 %v759_v33, %v1616_v4  ;;  %v675_v39 = vmul.f32 %v674_v34, %v1616_v4 }
 0x2b5   : > { %v686_v28 = vpop.permute.xlu0 %685 }
 0x2b6   : > { %v761_v36 = vsel %vm676_vm10, %v760_v35, 0.0  ;;  %v677_v52 = vsel %vm676_vm10, %v675_v39, 0.0  ;;  %v218_v39 = vld [vmem:[#allocation7] sm:$0xf] }
 0x2b7   : > { %v762_v55 = vrot.slane %v761_v36, 4  ;;  %v678_v48 = vrot.slane %v677_v52, 4 }
 0x2b9   : > { %v763_v58 = vadd.f32 %v762_v55, %v761_v36  ;;  %v679_v27 = vadd.f32 %v678_v48, %v677_v52  ;;  %v1411_v36 = vmov 21  }
 0x2bb   : > { %v764_v41 = vrot.slane %v763_v58, 2  ;;  %v680_v38 = vrot.slane %v679_v27, 2 }
 0x2bd   : > { %v681_v53 = vadd.f32 %v680_v38, %v679_v27  ;;  %v765_v57 = vadd.f32 %v764_v41, %v763_v58 }
 0x2bf   : > { %v682_v60 = vrot.slane %v681_v53, 1  ;;  %v766_v49 = vrot.slane %v765_v57, 1 }
 0x2c1   : > { %v683_v62 = vadd.f32 %v682_v60, %v681_v53  ;;  %v767_v63 = vadd.f32 %v766_v49, %v765_v57 }
 0x2c3   : > { %v688_v0 = vadd.f32 %v686_v28, %v683_v62  ;;  %v768_v1 = vadd.f32 %v767_v63, %v686_v28 }
 0x2c5   : > { %v690_v42 = vmul.f32 0.70710677, %v688_v0  ;;  %v770_v51 = vmul.f32 0.70710677, %v768_v1  ;;  %v689_v54 = vmul.f32 0.5, %v688_v0  ;;  %v769_v8 = vmul.f32 0.5, %v768_v1 }
 0x2c7   : > { %1220 = verf.f32 %v690_v42 }
 0x2c8   : > { %1222 = verf.f32 %v770_v51 }
 0x2d1   : > { %v1221_v59 = vpop.eup %1220 }
 0x2d2   : > { %v1223_v40 = vpop.eup %1222  ;;  %v692_v5 = vadd.f32 1.0, %v1221_v59 }
 0x2d3   : > { %v772_v10 = vadd.f32 1.0, %v1223_v40 }
 0x2d4   : > { %v693_v2 = vmul.f32 %v692_v5, %v689_v54 }
 0x2d5   : > { %v773_v45 = vmul.f32 %v772_v10, %v769_v8 }
 0x2d6   : > { %v697_v12 = vrot.slane %v693_v2, %v1835_v61 }
 0x2d7   : > { %v777_v14 = vrot.slane %v773_v45, %v1835_v61  ;;  %v1409_v61 = vmov 12  }
 0x2d8   : > { %699 = vrot.lane.b32.xlu1 %v697_v12, %s1407_s5  ;;  %1198 = vset.pattern.permute.xlu0 %v1409_v61 }
 0x2d9   : > { %779 = vrot.lane.b32.xlu0 %v777_v14, %s1407_s5  ;;  %1199 = vset.pattern.permute.xlu1 %v1409_v61 }
 0x34a   : > { %v700_v15 = vpop.permute.xlu1 %699 }
 0x34b   : > { %v702_v18 = vmul.f32 %v700_v15, %v1616_v4  ;;  %v780_v50 = vpop.permute.xlu0 %779 }
 0x34c   : > { %v782_v19 = vmul.f32 %v780_v50, %v1616_v4 }
 0x34d   : > { %704 = vrot.lane.b32.xlu1 %v702_v18, %s1408_s8 }
 0x34e   : > { %784 = vrot.lane.b32.xlu0 %v782_v19, %s1408_s8 }
 0x3bf   : > { %v705_v22 = vpop.permute.xlu1 %704 }
 0x3c0   : > { %v785_v46 = vpop.permute.xlu0 %784  ;;  %v708_v23 = vsel %vm707_vm11, %v705_v22, 0.0 }
 0x3c1   : > { %709 = vadd.xlane.f32.xlu1 %v708_v23  ;;  %v787_v20 = vsel %vm707_vm11, %v785_v46, 0.0 }
 0x3c2   : > { %788 = vadd.xlane.f32.xlu0 %v787_v20 }
 0x44e   : > { %v710_v24 = vpop.xlane.xlu1 %709 }
 0x44f   : > { %v711_v44 = vadd.f32 %v710_v24, %v1616_v4  ;;  %v789_v25 = vpop.xlane.xlu0 %788 }
 0x450   : > { %v790_v29 = vadd.f32 %v789_v25, %v1616_v4 }
 0x451   : > { %v1099_v30 = vmul.f32 -1.442695, %v711_v44 }
 0x452   : > { %v1100_v31 = vmul.f32 -1.442695, %v790_v29 }
 0x453   : > { %1224 = vpow2.f32 %v1099_v30 }
 0x454   : > { %1226 = vpow2.f32 %v1100_v31 }
 0x45d   : > { %v1225_v13 = vpop.eup %1224 }
 0x45e   : > { %v1227_v26 = vpop.eup %1226  ;;  %v715_v32 = vadd.f32 1.0, %v1225_v13 }
 0x45f   : > { %v794_v33 = vadd.f32 1.0, %v1227_v26 }
 0x460   : > { %1228 = vrcp.f32 %v715_v32 }
 0x461   : > { %1230 = vrcp.f32 %v794_v33 }
 0x46a   : > { %v1229_v34 = vpop.eup %1228 }
 0x46b   : > { %v1231_v35 = vpop.eup %1230  ;;  %720 = vperm.xlu0 %1198, %v1229_v34  }
 0x46c   : > { %799 = vperm.xlu1 %1199, %v1231_v35  }
 0x46f   : > { %1201 = vset.pattern.permute.xlu0 %v1411_v36 }
 0x470   : > { %819 = vrot.lane.b32.xlu1 %v218_v39, %s1410_s9 }
 0x471   : > { %1200 = vset.pattern.permute.xlu1 %v1411_v36 }
 0x474   : > { %816 = vperm.xlu1 %1200, %v218_v39  }
 0x4ea   : > { %v721_v4 = vpop.permute.xlu0 %720 }
 0x4eb   : > { %v800_v52 = vpop.permute.xlu1 %799  ;;  %v723_v55 = vmul.f32 %v721_v4, %v1843_v3  ;;  %v724_v48 = vmul.f32 %v721_v4, %v1847_v7  ;;  %v725_v58 = vmul.f32 %v721_v4, %v1855_v9  ;;  %v726_v27 = vmul.f32 %v721_v4, %v1859_v16 }
 0x4ec   : > { %v802_v41 = vmul.f32 %v800_v52, %v1840_v37  ;;  %v803_v38 = vmul.f32 %v800_v52, %v1845_v6  ;;  %v804_v53 = vmul.f32 %v800_v52, %v1849_v47  ;;  %v805_v57 = vmul.f32 %v800_v52, %v1851_v56 }
 0x4ee   : > { %v806_v60 = vadd.f32 %v802_v41, %v723_v55  ;;  %v807_v49 = vadd.f32 %v803_v38, %v724_v48  ;;  %v808_v28 = vadd.f32 %v804_v53, %v725_v58  ;;  %v809_v62 = vadd.f32 %v805_v57, %v726_v27 }
 0x4ef   : > { %v820_v37 = vpop.permute.xlu1 %819 }
 0x4f0   : > { %v811_v3 = vmul.f32 %v807_v49, %v1853_v43  ;;  %v813_v7 = vmul.f32 %v809_v62, %v1869_v21  ;;  %v810_v9 = vmul.f32 %v806_v60, %v1837_v11  ;;  %v812_v16 = vmul.f32 %v808_v28, %v1861_v17 }
 0x4f2   : > { %824 = vmatprep.subr.mxu0 %v811_v3  ;;  %895 = vmatprep.subr.mxu1 %v813_v7 }
 0x4f3   : > { %825 = vmatpush1.msra.mxu0 %v810_v9  ;;  %896 = vmatpush1.msra.mxu1 %v812_v16  ;;  %v817_v6 = vpop.permute.xlu1 %816 }
 0x4f4   : > { %1101 = vmatmul.mubr.msk.f32.vlgmr.msra.gmra.mrb[2].mxu0 %vm821_vm12, %v820_v37  ;;  %1102 = vmatmul.mubr.msk.f32.vlgmr.msra.gmra.mrb[2].mxu1 %vm821_vm12, %v820_v37 }
 0x5c7   : > { %v890_v47 = vpop.f32.mrb[2].mxu0  ;;  %v961_v56 = vpop.f32.mrb[2].mxu1 }
 0x5c8   : > { %v891_v43 = vadd.f32 %v890_v47, %v817_v6  ;;  %v962_v21 = vadd.f32 %v961_v56, %v817_v6  ;;  %v892_v63 = vpop.f32.mrb[3].mxu0  ;;  %v963_v11 = vpop.f32.mrb[3].mxu1 }
 0x5c9   : > { %v893_v17 = vadd.f32 %v892_v63, %v817_v6  ;;  %v964_v0 = vadd.f32 %v963_v11, %v817_v6 }
 0x5cb   : > { %v970_v1 = vcombine.low %v891_v43, %v893_v17  ;;  %v971_v42 = vcombine.low %v962_v21, %v964_v0 }
 0x5cd   : > { %974 = vst [vmem:[%s213_s10] sm:$0xff] %v970_v1  ;;  %975 = vst [vmem:[%s213_s10 + $0x8] sm:$0xff] %v971_v42 }
 0x5ce   : > { %1331 = shalt.err (!%p1328_p2)
}
 0x5cf   : > { %s1332_s11 = scalar_lea.hbm %s1905_s20, 256  ;;  %s1336_s30 = scalar_lea.hbm %s1952_s3, 512 }
 0x5d0   : > { %p1333_p13 = scmp.ne.s32.totalorder %s1905_s20, %s1332_s11  ;;  %p1337_p4 = scmp.lt.u32.totalorder %s1905_s20, %s1952_s3 }
 0x5d1   : > { %p1338_p5 = scmp.lt.u32.totalorder %s1336_s30, %s1332_s11  ;;  %p1340_p11 = scmp.lt.u32.totalorder %s1332_s11, %s1905_s20 }
 0x5d2   : > { %p1334_p6 = pnand %p1333_p13, %p1966_p0 }
 0x5d3   : > { %p1339_p8 = por %p1338_p5, %p1337_p4 }
 0x5d4   : > { %p1335_p10 = pneg %p1334_p6 }
 0x5d5   : > { %p1341_p1 = por %p1340_p11, %p1339_p8 }
 0x5d7   : > { %p1342_p3 = pnand %p1341_p1, %p1335_p10 }
 0x5d9   : > { %1345 = shalt.err (!%p1342_p3)
}
 0x5da   : > { %1120 = dma.vmem_to_hbm [thread:$0]  (%p1966_p0), %s1907_s28, 256, %s1905_s20, %s977_s16  }
 0x5db PF: > { %s1003_s8 = sand.u32 1, %s1376_s12   ;;  %p1967_p7 = scmp.ne.s32.totalorder %s1957_s19, 0 }
 0x5dc   : > { %p1968_p9 = scmp.ge.s32.totalorder %s1388_s15, 2  ;;  %s1004_s9 = scalar_lea.sflag [#allocation4], %s1003_s8 }
 0x5de   : > { %p1134_p12 = pnand %p1968_p9, %p1967_p7 }
 0x5e0   : > { %1371 = dma.done.wait (!%p1134_p12), %s1004_s9, 256  }
 0x5e1   : > { %1373 = vsyncadd (!%p1134_p12), %s1004_s9, 4294967040  ;;  %p17_p2 = scmp.ge.s32.totalorder %s1543_s4, 4   ;;  %s1969_s12 = smov %s1380_s13 }
 0x5e2   : > { %s1970_s13 = smov %s1384_s14  ;;  %s1971_s14 = smov %s1559_s7 }
 0x5e3   : > { %s1972_s15 = smov %s1543_s4  ;;  %19 = sbr.rel (!%p17_p2) target bundleno = 6 (0x6), region = 87 }
 0x5ea   :  { %1009 = vsyncpa [#allocation3], 1 }
 0x5eb   :  { %1011 = vsyncpa [#allocation3 + $0x1], 1 }
 0x5ec   :  { %1012 = vsyncpa [#allocation6], 1 }
 0x5ed   :  { %1013 = vsyncpa [#allocation4], 1 }
 0x5ee   :  { %1015 = vsyncpa [#allocation4 + $0x1], 1 }

</bundles_post_ra>
